<compile_context>
chip_gen: v5e
topology: v5e:2x2
jax: 0.10.0
libtpu: 0.0.40
codegen_flags: <defaults>
</compile_context>

<pallas_src>
import math
import jax
import jax.numpy as jnp
from jax.experimental import pallas as pl
from jax.experimental.pallas import tpu as pltpu


def _round_up(x, m):
    return ((x + m - 1) // m) * m


def _vmem_budget_bytes():
    """Per-generation VMEM budget (leave 25% headroom for compiler scratch)."""
    try:
        cap = int(pltpu.get_tpu_info().vmem_capacity_bytes)
    except Exception:
        cap = 64 * 1024 * 1024        # conservative default (v7x per-TensorCore)
    return (cap * 3) // 4


def _estimate_vmem_bytes(tile_t, cp, h, out_itemsize):
    win = tile_t + 2 * h
    window = 2 * win * cp * 2                      # bf16 halo window, double-buffered
    out_blocks = 2 * tile_t * cp * out_itemsize    # pipelined output blocks
    mask_blocks = 2 * tile_t * 4
    weights = 2 * (3 * cp * cp * 2 + cp * cp * 2 + 2 * cp * 4)
    temps = 6 * tile_t * cp * 4                    # f32 acc / relayout / epilogue temps
    return window + out_blocks + mask_blocks + weights + temps


def _make_kernel(TILE_T, Cp, H, d, nT):
    """One (batch, time-tile) grid step.

    refs:
      x_hbm   : (N, T_round + 2H, Cp) bf16, HBM (pl.ANY) -> manual halo-window DMA
      mask_ref: (1, TILE_T, 1)        f32
      w_ref   : (3, Cp, Cp)           bf16  per-tap (C_in, C_out) weights
      b_ref   : (1, Cp)               f32
      wp_ref  : (Cp, Cp)              bf16
      bp_ref  : (1, Cp)               f32
      o_ref   : (1, TILE_T, Cp)       x.dtype (output)
      xwin    : (2, WIN, Cp)          bf16  VMEM double buffer
      sem     : (2,)                  DMA semaphores
    """
    WIN = TILE_T + 2 * H

    def kernel(x_hbm, mask_ref, w_ref, b_ref, wp_ref, bp_ref, o_ref, xwin, sem):
        n = pl.program_id(0)
        ti = pl.program_id(1)
        slot = ti % 2

        def start_window(tile_idx, s):
            pltpu.make_async_copy(
                x_hbm.at[n, pl.ds(tile_idx * TILE_T, WIN)],
                xwin.at[s], sem.at[s]).start()

        # Prime this batch row's first window (the only exposed DMA per row).
        @pl.when(ti == 0)
        def _():
            start_window(0, 0)

        # Prefetch the next tile's window into the other slot; overlaps compute.
        @pl.when(ti + 1 < nT)
        def _():
            start_window(ti + 1, 1 - slot)

        # Wait for the current tile's window.
        pltpu.make_async_copy(x_hbm.at[n, pl.ds(0, WIN)],
                              xwin.at[slot], sem.at[slot]).wait()

        xw = xwin.at[slot]                                   # (WIN, Cp) bf16 view
        x_c = xw[pl.ds(H, TILE_T), :]                        # center tap (aligned), bf16

        # Dilated conv (k=3): three accumulated bf16 MXU matmuls, f32 accumulation.
        acc = jnp.dot(xw[pl.ds(H - d, TILE_T), :], w_ref[0],
                      preferred_element_type=jnp.float32)    # x[t-d]
        acc = acc + jnp.dot(x_c, w_ref[1],
                            preferred_element_type=jnp.float32)  # x[t]
        acc = acc + jnp.dot(xw[pl.ds(H + d, TILE_T), :], w_ref[2],
                            preferred_element_type=jnp.float32)  # x[t+d]
        h = jnp.maximum(acc + b_ref[...], 0.0)               # bias + ReLU

        # 1x1 conv == matmul over channels.
        out = jnp.dot(h.astype(jnp.bfloat16), wp_ref[...],
                      preferred_element_type=jnp.float32) + bp_ref[...]
        # TODO(synk): nn.Dropout() training mode not implemented; inference
        # (identity) semantics are used here.

        # Residual add in f32, then mask (broadcast over channels).
        res = (x_c.astype(jnp.float32) + out) * mask_ref[0]
        o_ref[0] = res.astype(o_ref.dtype)

    return kernel


def dilated_residual_layer_ntc(x_ntc, mask_nt1, params, dilation, tile_t=None):
    """Core entry point. x_ntc: (N, T, C), mask_nt1: (N, T, 1). Returns (N, T, C)
    in x_ntc.dtype (pass bf16 activations when stacking layers).

    Prefer this NTC interface when stacking layers (avoids per-layer transposes).
    """
    N, T, C = x_ntc.shape
    d = int(dilation)
    out_dtype = x_ntc.dtype
    out_isz = jnp.dtype(out_dtype).itemsize

    Cp = _round_up(C, 128)                            # lane-dense channels
    H = _round_up(max(d, 1), 16)                      # halo; multiple of 16 (>= d)

    # Time tile: default max(2048, 8*H); user override rounded to 16.
    if tile_t is None:
        TILE_T = max(2048, 8 * H)
    else:
        TILE_T = max(16, int(tile_t))
    TILE_T = _round_up(TILE_T, 16)
    TILE_T = min(TILE_T, _round_up(T, 16))

    # Shrink tile if the estimated VMEM footprint would not fit this generation.
    budget = _vmem_budget_bytes()
    while TILE_T > 128 and _estimate_vmem_bytes(TILE_T, Cp, H, out_isz) > budget:
        TILE_T = _round_up(TILE_T // 2, 16)

    T_round = _round_up(T, TILE_T)
    nT = T_round // TILE_T
    WIN = TILE_T + 2 * H
    est = _estimate_vmem_bytes(TILE_T, Cp, H, out_isz)
    vmem_limit = int(min(budget, max(32 * 1024 * 1024, 2 * est)))

    w_dil, b_dil, w_1x1, b_1x1 = params
    pad_c = ((0, Cp - C), (0, Cp - C))
    # PyTorch conv weights: (C_out, C_in, K). Per-tap (C_in, C_out), padded, bf16.
    w3 = jnp.stack([jnp.pad(jnp.transpose(w_dil[:, :, k]), pad_c) for k in range(3)],
                   axis=0).astype(jnp.bfloat16)                        # (3, Cp, Cp)
    wp = jnp.pad(jnp.transpose(w_1x1[:, :, 0]), pad_c).astype(jnp.bfloat16)
    b = jnp.pad(b_dil, (0, Cp - C)).reshape(1, Cp).astype(jnp.float32)
    bp = jnp.pad(b_1x1, (0, Cp - C)).reshape(1, Cp).astype(jnp.float32)

    # bf16 activation copy in HBM: channels -> Cp, time -> [H | T (+tail zeros) | H].
    x_p = jnp.pad(x_ntc.astype(jnp.bfloat16),
                  ((0, 0), (H, T_round - T + H), (0, Cp - C)))
    mask_p = jnp.pad(mask_nt1.astype(jnp.float32),
                     ((0, 0), (0, T_round - T), (0, 0)))

    kernel = _make_kernel(TILE_T, Cp, H, d, nT)

    out = pl.pallas_call(
        kernel,
        out_shape=jax.ShapeDtypeStruct((N, T_round, Cp), out_dtype),
        grid_spec=pltpu.PrefetchScalarGridSpec(
            num_scalar_prefetch=0,
            grid=(N, nT),
            in_specs=[
                pl.BlockSpec(memory_space=pl.ANY),                        # x (HBM, manual DMA)
                pl.BlockSpec((1, TILE_T, 1), lambda n, t: (n, t, 0)),     # mask
                # NOTE: weight blocks never change index; on v7x with large Cp,
                # pipeline_mode=pl.Buffered(1) would drop the redundant 2nd buffer.
                pl.BlockSpec((3, Cp, Cp), lambda n, t: (0, 0, 0)),        # dilated-conv taps
                pl.BlockSpec((1, Cp), lambda n, t: (0, 0)),               # dilated-conv bias
                pl.BlockSpec((Cp, Cp), lambda n, t: (0, 0)),              # 1x1 weights
                pl.BlockSpec((1, Cp), lambda n, t: (0, 0)),               # 1x1 bias
            ],
            out_specs=pl.BlockSpec((1, TILE_T, Cp), lambda n, t: (n, t, 0)),
            scratch_shapes=[
                pltpu.VMEM((2, WIN, Cp), jnp.bfloat16),   # double-buffered halo window
                pltpu.SemaphoreType.DMA((2,)),
            ]),
        compiler_params=pltpu.CompilerParams(
            # Batch parallel (megacore-safe); time arbitrary so the double-buffer
            # prefetch carry stays core-local.
            dimension_semantics=("parallel", "arbitrary"),
            vmem_limit_bytes=vmem_limit),
    )(x_p, mask_p, w3, b, wp, bp)

    return out[:, :T, :C]


def dilated_residual_layer(x_nct, mask_nct, params, dilation, tile_t=None):
    """Drop-in NCT interface matching the PyTorch module.

    When stacking many layers, call dilated_residual_layer_ntc directly (bf16
    activations, NTC layout) to avoid per-layer transpose/pad HBM passes.
    """
    x = jnp.transpose(x_nct, (0, 2, 1))                        # (N, T, C)
    m = jnp.transpose(mask_nct[:, 0:1, :], (0, 2, 1))          # (N, T, 1)
    y = dilated_residual_layer_ntc(x, m, params, dilation, tile_t=tile_t)
    return jnp.transpose(y, (0, 2, 1))                         # (N, C, T)


def init_params(key, channels):
    """Deterministic init mimicking PyTorch Conv1d default (uniform +/- 1/sqrt(fan_in*k))."""
    k1, k2, k3, k4 = jax.random.split(key, 4)
    bound3 = 1.0 / math.sqrt(channels * 3)
    bound1 = 1.0 / math.sqrt(channels * 1)
    w_dil = jax.random.uniform(k1, (channels, channels, 3), jnp.float32, -bound3, bound3)
    b_dil = jax.random.uniform(k2, (channels,), jnp.float32, -bound3, bound3)
    w_1x1 = jax.random.uniform(k3, (channels, channels, 1), jnp.float32, -bound1, bound1)
    b_1x1 = jax.random.uniform(k4, (channels,), jnp.float32, -bound1, bound1)
    return (w_dil, b_dil, w_1x1, b_1x1)


def _reference_jnp(x_nct, mask_nct, params, dilation):
    """Plain-JAX reference with the same numerics policy as the kernel:
    bf16 activations in HBM, bf16 MXU operands, f32 accumulation, f32 residual add."""
    w_dil, b_dil, w_1x1, b_1x1 = params
    N, C, T = x_nct.shape
    d = dilation
    xb = x_nct.astype(jnp.bfloat16)
    xp = jnp.pad(xb, ((0, 0), (0, 0), (d, d)))
    taps = [xp[:, :, 0:T], xp[:, :, d:d + T], xp[:, :, 2 * d:2 * d + T]]
    h = b_dil[None, :, None].astype(jnp.float32)
    for k, tap in enumerate(taps):
        h = h + jnp.einsum('oc,nct->not',
                           w_dil[:, :, k].astype(jnp.bfloat16), tap,
                           preferred_element_type=jnp.float32)
    h = jnp.maximum(h, 0.0)
    out = jnp.einsum('oc,nct->not',
                     w_1x1[:, :, 0].astype(jnp.bfloat16),
                     h.astype(jnp.bfloat16),
                     preferred_element_type=jnp.float32) + b_1x1[None, :, None]
    return (xb.astype(jnp.float32) + out) * mask_nct[:, 0:1, :]


def _run_case(key, N, C, T, dilation, tile_t):
    k_x, k_m, k_p = jax.random.split(key, 3)
    x = jax.random.normal(k_x, (N, C, T), jnp.float32)
    mask = (jax.random.uniform(k_m, (N, 1, T)) > 0.2).astype(jnp.float32)
    mask = jnp.broadcast_to(mask, (N, C, T))
    params = init_params(k_p, C)

    out = dilated_residual_layer(x, mask, params, dilation, tile_t=tile_t)
    out = jax.block_until_ready(out)

    ref = _reference_jnp(x, mask, params, dilation)
    assert out.shape == (N, C, T)
    assert out.dtype == x.dtype
    assert jnp.allclose(out, ref, atol=1e-2, rtol=1e-2), "mismatch vs reference"


if __name__ == "__main__":
    key = jax.random.PRNGKey(0)
    k0, k1 = jax.random.split(key, 2)

    # Small config matching the module, default (large) tile -> single time tile.
    _run_case(k0, N=2, C=16, T=32, dilation=2, tile_t=None)
    # Exercise the tiled-time / double-buffered DMA path (3 tiles, halo crosses
    # tile boundaries).
    _run_case(k1, N=2, C=16, T=80, dilation=3, tile_t=32)

    print("KERNEL_OK")
</pallas_src>

<mosaic_0001>
module attributes {stable_mosaic.version = 11 : i64} {
  func.func @kernel(%arg0: i32, %arg1: i32, %arg2: memref<2x64x128xbf16, #tpu.memory_space<any>>, %arg3: memref<1x32x1xf32, #tpu.memory_space<vmem>>, %arg4: memref<3x128x128xbf16, #tpu.memory_space<vmem>>, %arg5: memref<1x128xf32, #tpu.memory_space<vmem>>, %arg6: memref<128x128xbf16, #tpu.memory_space<vmem>>, %arg7: memref<1x128xf32, #tpu.memory_space<vmem>>, %arg8: memref<1x32x128xf32, #tpu.memory_space<vmem>>, %arg9: memref<2x64x128xbf16, #tpu.memory_space<vmem>>, %arg10: memref<2x!tpu.dma_semaphore, #tpu.memory_space<semaphore_mem>>) attributes {dimension_semantics = [#tpu.dimension_semantics<parallel>, #tpu.dimension_semantics<arbitrary>], iteration_bounds = array<i64: 2, 1>, scalar_prefetch = 0 : i64, scratch_operands = 2 : i64, tpu.core_type = #tpu.core_type<tc>, window_params = [{}, {transform_indices = @transform_1, window_bounds = array<i64: 1, 32, 1>}, {pipeline_mode = #tpu.pipeline_mode<synchronous>, transform_indices = @transform_2, window_bounds = array<i64: 3, 128, 128>}, {pipeline_mode = #tpu.pipeline_mode<synchronous>, transform_indices = @transform_3, window_bounds = array<i64: 1, 128>}, {pipeline_mode = #tpu.pipeline_mode<synchronous>, transform_indices = @transform_4, window_bounds = array<i64: 128, 128>}, {pipeline_mode = #tpu.pipeline_mode<synchronous>, transform_indices = @transform_5, window_bounds = array<i64: 1, 128>}, {transform_indices = @transform_6, window_bounds = array<i64: 1, 32, 128>}]} {
    %c2_i32 = arith.constant 2 : i32
    %c0_i32 = arith.constant 0 : i32
    %0 = arith.cmpi eq, %c2_i32, %c0_i32 : i32
    %c1_i32 = arith.constant 1 : i32
    %1 = arith.select %0, %c1_i32, %c2_i32 : i32
    %2 = arith.remsi %arg1, %1 : i32
    %c0_i32_0 = arith.constant 0 : i32
    %3 = arith.cmpi ne, %2, %c0_i32_0 : i32
    %c0_i32_1 = arith.constant 0 : i32
    %4 = arith.cmpi slt, %2, %c0_i32_1 : i32
    %c0_i32_2 = arith.constant 0 : i32
    %5 = arith.cmpi slt, %1, %c0_i32_2 : i32
    %6 = arith.xori %4, %5 : i1
    %7 = arith.andi %6, %3 : i1
    %8 = arith.addi %2, %1 : i32
    %9 = arith.select %7, %8, %2 : i32
    %c0_i32_3 = arith.constant 0 : i32
    %10 = arith.cmpi eq, %arg1, %c0_i32_3 : i32
    %11 = arith.extui %10 : i1 to i32
    %c0_i32_4 = arith.constant 0 : i32
    %12 = arith.cmpi ne, %11, %c0_i32_4 : i32
    scf.if %12 {
      %c0_i32_43 = arith.constant 0 : i32
      %c0_i32_44 = arith.constant 0 : i32
      %c0_i32_45 = arith.constant 0 : i32
      %c0_i32_46 = arith.constant 0 : i32
      %63 = tpu.memref_slice %arg2[%arg0, %c0_i32_45, %c0_i32_46] : memref<2x64x128xbf16, #tpu.memory_space<any>> -> memref<1x64x128xbf16, #tpu.memory_space<any>>
      %64 = tpu.memref_squeeze %63 : memref<1x64x128xbf16, #tpu.memory_space<any>> -> memref<64x128xbf16, #tpu.memory_space<any>>
      %c0_i32_47 = arith.constant 0 : i32
      %c0_i32_48 = arith.constant 0 : i32
      %65 = tpu.memref_slice %arg9[%c0_i32_43, %c0_i32_47, %c0_i32_48] : memref<2x64x128xbf16, #tpu.memory_space<vmem>> -> memref<1x64x128xbf16, #tpu.memory_space<vmem>>
      %66 = tpu.memref_squeeze %65 : memref<1x64x128xbf16, #tpu.memory_space<vmem>> -> memref<64x128xbf16, #tpu.memory_space<vmem>>
      %67 = tpu.memref_slice %arg10[%c0_i32_44] : memref<2x!tpu.dma_semaphore, #tpu.memory_space<semaphore_mem>> -> memref<1x!tpu.dma_semaphore, #tpu.memory_space<semaphore_mem>>
      %68 = tpu.memref_squeeze %67 : memref<1x!tpu.dma_semaphore, #tpu.memory_space<semaphore_mem>> -> memref<!tpu.dma_semaphore, #tpu.memory_space<semaphore_mem>>
      tpu.enqueue_dma source(%64 : memref<64x128xbf16, #tpu.memory_space<any>>) target(%66 : memref<64x128xbf16, #tpu.memory_space<vmem>>) target_semaphore(%68 : memref<!tpu.dma_semaphore, #tpu.memory_space<semaphore_mem>>)
    } else {
    }
    %c1_i32_5 = arith.constant 1 : i32
    %13 = arith.addi %arg1, %c1_i32_5 : i32
    %c1_i32_6 = arith.constant 1 : i32
    %14 = arith.cmpi slt, %13, %c1_i32_6 : i32
    %15 = arith.extui %14 : i1 to i32
    %c0_i32_7 = arith.constant 0 : i32
    %16 = arith.cmpi ne, %15, %c0_i32_7 : i32
    scf.if %16 {
      %c1_i32_43 = arith.constant 1 : i32
      %63 = arith.addi %arg1, %c1_i32_43 : i32
      %c1_i32_44 = arith.constant 1 : i32
      %64 = arith.subi %c1_i32_44, %9 : i32
      %c32_i32 = arith.constant 32 : i32
      %65 = arith.muli %63, %c32_i32 : i32
      %c0_i32_45 = arith.constant 0 : i32
      %66 = tpu.memref_slice %arg2[%arg0, %65, %c0_i32_45] : memref<2x64x128xbf16, #tpu.memory_space<any>> -> memref<1x64x128xbf16, #tpu.memory_space<any>>
      %67 = tpu.memref_squeeze %66 : memref<1x64x128xbf16, #tpu.memory_space<any>> -> memref<64x128xbf16, #tpu.memory_space<any>>
      %c0_i32_46 = arith.constant 0 : i32
      %c0_i32_47 = arith.constant 0 : i32
      %68 = tpu.memref_slice %arg9[%64, %c0_i32_46, %c0_i32_47] : memref<2x64x128xbf16, #tpu.memory_space<vmem>> -> memref<1x64x128xbf16, #tpu.memory_space<vmem>>
      %69 = tpu.memref_squeeze %68 : memref<1x64x128xbf16, #tpu.memory_space<vmem>> -> memref<64x128xbf16, #tpu.memory_space<vmem>>
      %70 = tpu.memref_slice %arg10[%64] : memref<2x!tpu.dma_semaphore, #tpu.memory_space<semaphore_mem>> -> memref<1x!tpu.dma_semaphore, #tpu.memory_space<semaphore_mem>>
      %71 = tpu.memref_squeeze %70 : memref<1x!tpu.dma_semaphore, #tpu.memory_space<semaphore_mem>> -> memref<!tpu.dma_semaphore, #tpu.memory_space<semaphore_mem>>
      tpu.enqueue_dma source(%67 : memref<64x128xbf16, #tpu.memory_space<any>>) target(%69 : memref<64x128xbf16, #tpu.memory_space<vmem>>) target_semaphore(%71 : memref<!tpu.dma_semaphore, #tpu.memory_space<semaphore_mem>>)
    } else {
    }
    %c0_i32_8 = arith.constant 0 : i32
    %c0_i32_9 = arith.constant 0 : i32
    %17 = tpu.memref_slice %arg2[%arg0, %c0_i32_8, %c0_i32_9] : memref<2x64x128xbf16, #tpu.memory_space<any>> -> memref<1x64x128xbf16, #tpu.memory_space<any>>
    %18 = tpu.memref_squeeze %17 : memref<1x64x128xbf16, #tpu.memory_space<any>> -> memref<64x128xbf16, #tpu.memory_space<any>>
    %c0_i32_10 = arith.constant 0 : i32
    %c0_i32_11 = arith.constant 0 : i32
    %19 = tpu.memref_slice %arg9[%9, %c0_i32_10, %c0_i32_11] : memref<2x64x128xbf16, #tpu.memory_space<vmem>> -> memref<1x64x128xbf16, #tpu.memory_space<vmem>>
    %20 = tpu.memref_squeeze %19 : memref<1x64x128xbf16, #tpu.memory_space<vmem>> -> memref<64x128xbf16, #tpu.memory_space<vmem>>
    %21 = tpu.memref_slice %arg10[%9] : memref<2x!tpu.dma_semaphore, #tpu.memory_space<semaphore_mem>> -> memref<1x!tpu.dma_semaphore, #tpu.memory_space<semaphore_mem>>
    %22 = tpu.memref_squeeze %21 : memref<1x!tpu.dma_semaphore, #tpu.memory_space<semaphore_mem>> -> memref<!tpu.dma_semaphore, #tpu.memory_space<semaphore_mem>>
    tpu.wait_dma2 semaphore(%22 : memref<!tpu.dma_semaphore, #tpu.memory_space<semaphore_mem>>) src(%18 : memref<64x128xbf16, #tpu.memory_space<any>>) dst(%20 : memref<64x128xbf16, #tpu.memory_space<vmem>>)
    %c0_i32_12 = arith.constant 0 : i32
    %c0_i32_13 = arith.constant 0 : i32
    %23 = tpu.memref_slice %arg9[%9, %c0_i32_12, %c0_i32_13] : memref<2x64x128xbf16, #tpu.memory_space<vmem>> -> memref<1x64x128xbf16, #tpu.memory_space<vmem>>
    %24 = tpu.memref_squeeze %23 : memref<1x64x128xbf16, #tpu.memory_space<vmem>> -> memref<64x128xbf16, #tpu.memory_space<vmem>>
    %c16 = arith.constant 16 : index
    %c0 = arith.constant 0 : index
    %25 = vector.load %24[%c16, %c0] : memref<64x128xbf16, #tpu.memory_space<vmem>>, vector<32x128xbf16>
    %c0_i32_14 = arith.constant 0 : i32
    %c0_i32_15 = arith.constant 0 : i32
    %26 = tpu.memref_slice %arg9[%9, %c0_i32_14, %c0_i32_15] : memref<2x64x128xbf16, #tpu.memory_space<vmem>> -> memref<1x64x128xbf16, #tpu.memory_space<vmem>>
    %27 = tpu.memref_squeeze %26 : memref<1x64x128xbf16, #tpu.memory_space<vmem>> -> memref<64x128xbf16, #tpu.memory_space<vmem>>
    %c14 = arith.constant 14 : index
    %c0_16 = arith.constant 0 : index
    %28 = vector.load %27[%c14, %c0_16] : memref<64x128xbf16, #tpu.memory_space<vmem>>, vector<32x128xbf16>
    %c0_17 = arith.constant 0 : index
    %c0_18 = arith.constant 0 : index
    %c0_19 = arith.constant 0 : index
    %29 = vector.load %arg4[%c0_17, %c0_18, %c0_19] : memref<3x128x128xbf16, #tpu.memory_space<vmem>>, vector<1x128x128xbf16>
    %30 = vector.shape_cast %29 : vector<1x128x128xbf16> to vector<128x128xbf16>
    %cst = arith.constant dense<0.000000e+00> : vector<32x128xf32>
    %31 = tpu.matmul %28, %30, %cst {dimension_numbers = #tpu.dot_dimension_numbers<[1], [0], [0], [1], [0, 0, 1, 1], [], []>} : vector<32x128xbf16>, vector<128x128xbf16>, vector<32x128xf32> -> vector<32x128xf32>
    %c1 = arith.constant 1 : index
    %c0_20 = arith.constant 0 : index
    %c0_21 = arith.constant 0 : index
    %32 = vector.load %arg4[%c1, %c0_20, %c0_21] : memref<3x128x128xbf16, #tpu.memory_space<vmem>>, vector<1x128x128xbf16>
    %33 = vector.shape_cast %32 : vector<1x128x128xbf16> to vector<128x128xbf16>
    %cst_22 = arith.constant dense<0.000000e+00> : vector<32x128xf32>
    %34 = tpu.matmul %25, %33, %cst_22 {dimension_numbers = #tpu.dot_dimension_numbers<[1], [0], [0], [1], [0, 0, 1, 1], [], []>} : vector<32x128xbf16>, vector<128x128xbf16>, vector<32x128xf32> -> vector<32x128xf32>
    %35 = arith.addf %31, %34 : vector<32x128xf32>
    %c0_i32_23 = arith.constant 0 : i32
    %c0_i32_24 = arith.constant 0 : i32
    %36 = tpu.memref_slice %arg9[%9, %c0_i32_23, %c0_i32_24] : memref<2x64x128xbf16, #tpu.memory_space<vmem>> -> memref<1x64x128xbf16, #tpu.memory_space<vmem>>
    %37 = tpu.memref_squeeze %36 : memref<1x64x128xbf16, #tpu.memory_space<vmem>> -> memref<64x128xbf16, #tpu.memory_space<vmem>>
    %c18 = arith.constant 18 : index
    %c0_25 = arith.constant 0 : index
    %38 = vector.load %37[%c18, %c0_25] : memref<64x128xbf16, #tpu.memory_space<vmem>>, vector<32x128xbf16>
    %c2 = arith.constant 2 : index
    %c0_26 = arith.constant 0 : index
    %c0_27 = arith.constant 0 : index
    %39 = vector.load %arg4[%c2, %c0_26, %c0_27] : memref<3x128x128xbf16, #tpu.memory_space<vmem>>, vector<1x128x128xbf16>
    %40 = vector.shape_cast %39 : vector<1x128x128xbf16> to vector<128x128xbf16>
    %cst_28 = arith.constant dense<0.000000e+00> : vector<32x128xf32>
    %41 = tpu.matmul %38, %40, %cst_28 {dimension_numbers = #tpu.dot_dimension_numbers<[1], [0], [0], [1], [0, 0, 1, 1], [], []>} : vector<32x128xbf16>, vector<128x128xbf16>, vector<32x128xf32> -> vector<32x128xf32>
    %42 = arith.addf %35, %41 : vector<32x128xf32>
    %c0_29 = arith.constant 0 : index
    %c0_30 = arith.constant 0 : index
    %43 = vector.load %arg5[%c0_29, %c0_30] : memref<1x128xf32, #tpu.memory_space<vmem>>, vector<1x128xf32>
    %44 = vector.broadcast %43 : vector<1x128xf32> to vector<32x128xf32>
    %45 = arith.addf %42, %44 : vector<32x128xf32>
    %cst_31 = arith.constant 0.000000e+00 : f32
    %46 = vector.broadcast %cst_31 : f32 to vector<32x128xf32>
    %47 = arith.maximumf %45, %46 : vector<32x128xf32>
    %48 = arith.truncf %47 : vector<32x128xf32> to vector<32x128xbf16>
    %c0_32 = arith.constant 0 : index
    %c0_33 = arith.constant 0 : index
    %49 = vector.load %arg6[%c0_32, %c0_33] : memref<128x128xbf16, #tpu.memory_space<vmem>>, vector<128x128xbf16>
    %cst_34 = arith.constant dense<0.000000e+00> : vector<32x128xf32>
    %50 = tpu.matmul %48, %49, %cst_34 {dimension_numbers = #tpu.dot_dimension_numbers<[1], [0], [0], [1], [0, 0, 1, 1], [], []>} : vector<32x128xbf16>, vector<128x128xbf16>, vector<32x128xf32> -> vector<32x128xf32>
    %c0_35 = arith.constant 0 : index
    %c0_36 = arith.constant 0 : index
    %51 = vector.load %arg7[%c0_35, %c0_36] : memref<1x128xf32, #tpu.memory_space<vmem>>, vector<1x128xf32>
    %52 = vector.broadcast %51 : vector<1x128xf32> to vector<32x128xf32>
    %53 = arith.addf %50, %52 : vector<32x128xf32>
    %54 = arith.extf %25 : vector<32x128xbf16> to vector<32x128xf32>
    %55 = arith.addf %54, %53 : vector<32x128xf32>
    %c0_37 = arith.constant 0 : index
    %c0_38 = arith.constant 0 : index
    %c0_39 = arith.constant 0 : index
    %56 = vector.load %arg3[%c0_37, %c0_38, %c0_39] : memref<1x32x1xf32, #tpu.memory_space<vmem>>, vector<1x32x1xf32>
    %57 = vector.shape_cast %56 : vector<1x32x1xf32> to vector<32x1xf32>
    %58 = vector.broadcast %57 : vector<32x1xf32> to vector<32x128xf32>
    %59 = arith.mulf %55, %58 : vector<32x128xf32>
    %c0_40 = arith.constant 0 : index
    %c0_41 = arith.constant 0 : index
    %c0_42 = arith.constant 0 : index
    %60 = vector.load %arg8[%c0_40, %c0_41, %c0_42] : memref<1x32x128xf32, #tpu.memory_space<vmem>>, vector<1x32x128xf32>
    %61 = vector.shape_cast %60 : vector<1x32x128xf32> to vector<32x128xf32>
    %62 = vector.shape_cast %59 : vector<32x128xf32> to vector<1x32x128xf32>
    tpu.vector_store %arg8[%c0_40, %c0_41, %c0_42], %62 {strides = array<i32>} : memref<1x32x128xf32, #tpu.memory_space<vmem>>, vector<1x32x128xf32>,
    return
  }
  func.func @transform_1(%arg0: i32, %arg1: i32) -> (i32, i32, i32) {
    %c0_i32 = arith.constant 0 : i32
    %c0_i32_0 = arith.constant 0 : i32
    return %arg0, %arg1, %c0_i32 : i32, i32, i32
  }
  func.func @transform_2(%arg0: i32, %arg1: i32) -> (i32, i32, i32) {
    %c0_i32 = arith.constant 0 : i32
    %c0_i32_0 = arith.constant 0 : i32
    %c0_i32_1 = arith.constant 0 : i32
    %c0_i32_2 = arith.constant 0 : i32
    return %c0_i32, %c0_i32_0, %c0_i32_1 : i32, i32, i32
  }
  func.func @transform_3(%arg0: i32, %arg1: i32) -> (i32, i32) {
    %c0_i32 = arith.constant 0 : i32
    %c0_i32_0 = arith.constant 0 : i32
    %c0_i32_1 = arith.constant 0 : i32
    return %c0_i32, %c0_i32_0 : i32, i32
  }
  func.func @transform_4(%arg0: i32, %arg1: i32) -> (i32, i32) {
    %c0_i32 = arith.constant 0 : i32
    %c0_i32_0 = arith.constant 0 : i32
    %c0_i32_1 = arith.constant 0 : i32
    return %c0_i32, %c0_i32_0 : i32, i32
  }
  func.func @transform_5(%arg0: i32, %arg1: i32) -> (i32, i32) {
    %c0_i32 = arith.constant 0 : i32
    %c0_i32_0 = arith.constant 0 : i32
    %c0_i32_1 = arith.constant 0 : i32
    return %c0_i32, %c0_i32_0 : i32, i32
  }
  func.func @transform_6(%arg0: i32, %arg1: i32) -> (i32, i32, i32) {
    %c0_i32 = arith.constant 0 : i32
    %c0_i32_0 = arith.constant 0 : i32
    return %arg0, %arg1, %c0_i32 : i32, i32, i32
  }
}

</mosaic_0001>

<bundles_post_ra>
// kernel: tpu_custom_call.1
= control target key start
LH: loop header
LB: loop body
LE: loop exit
PB: predicated region body
PF: predicated region fallthrough
CT: control target
= control target key end

     0   :  { %11 = vsyncpa [#allocation5], 0  ;;  %s1642_s0 = inlined_call_operand.vmem [shape: bf16[2,64,128], index: 0, kind: input, shape index: {}]   ;;  %s1643_s1 = inlined_call_operand.vmem [shape: f32[2,32,1], index: 1, kind: input, shape index: {}]   ;;  %s1644_s2 = inlined_call_operand.hbm [shape: bf16[3,128,128], index: 2, kind: input, shape index: {}]   ;;  %s1645_s3 = inlined_call_operand.vmem [shape: f32[1,128], index: 3, kind: input, shape index: {}]   ;;  %s1646_s4 = inlined_call_operand.hbm [shape: bf16[128,128], index: 4, kind: input, shape index: {}]   ;;  %s1647_s5 = inlined_call_operand.vmem [shape: f32[1,128], index: 5, kind: input, shape index: {}]   ;;  %s1648_s6 = inlined_call_operand.hbm [shape: f32[2,32,128], index: 6, kind: output, shape index: {}]  }
   0x1   :  { %12 = vsyncpa [#allocation8], 0 }
   0x2   :  { %13 = vsyncpa [#allocation6], 0 }
   0x3   :  { %15 = vsyncpa [#allocation6 + $0x1], 0  ;;  %s1467_s21 = smov 0   ;;  %s1469_s22 = smov 0  }
   0x4   :  { %s1471_s23 = smov 0   ;;  %s1473_s24 = smov 0  }
   0x5   :  { %s1475_s25 = smov 0   ;;  %s1477_s26 = smov 0  }
   0x6 LB: > { %s988_s27 = sadd.s32 4294967295, %s1423_s26   ;;  %s989_s28 = sadd.s32 4294967294, %s1423_s26   ;;  %s1423_s26 = sphi %s1477_s26, %s21_s26   ;;  %s1419_s25 = sphi %s1475_s25, %s1657_s25   ;;  %s1415_s24 = sphi %s1473_s24, %s1656_s24   ;;  %s1411_s23 = sphi %s1471_s23, %s1655_s23   ;;  %s1407_s22 = sphi %s1469_s22, %s1654_s22   ;;  %s1403_s21 = sphi %s1467_s21, %s1653_s21  }
   0x7   : > { %s33_s29 = sadd.s32 1, %s1419_s25  ;;  %s154_s30 = sadd.s32 1, %s1411_s23 }
   0x8   : > { %p35_p0 = scmp.ge.s32.totalorder %s33_s29, 2  ;;  %p164_p1 = scmp.ne.s32.totalorder %s1411_s23, %s1407_s22 }
   0x9   : > { %p165_p2 = scmp.eq.s32.totalorder %s988_s27, 1  ;;  %p170_p3 = scmp.ne.s32.totalorder %s1407_s22, %s1403_s21 }
   0xa   : > { %s1659_s29 = smov (%p35_p0, %s33_s29), 0  ;;  %p171_p5 = scmp.eq.s32.totalorder %s989_s28, 1 }
   0xb   : > { %p1507_p4 = por %p165_p2, %p164_p1  ;;  %s149_s8 = ssub.s32 %s1419_s25, %s1659_s29 }
   0xc   : > { %p990_p6 = scmp.ge.s32.totalorder %s1423_s26, 1  ;;  %p152_p7 = scmp.eq.s32.totalorder %s149_s8, 0 }
   0xd   : > { %p1514_p8 = por %p171_p5, %p170_p3  ;;  %p178_p9 = scmp.lt.s32.totalorder %s1423_s26, 3 }
   0xe   : > { %s1520_s10 = scalar_select %p152_p7, %s1411_s23, %s154_s30  }
   0xf   : > { %p1522_p10 = pnand %p990_p6, %p178_p9  ;;  %p1526_p11 = scmp.eq.s32.totalorder %s988_s27, 0 }
  0x10   : > { %s189_s15 = sshll.u32 %s1644_s2, 4  ;;  %s1425_s16 = smov [#allocation4]   ;;  %s190_s15 = int_to_ptr.hbm [resolvable:$true] %s189_s15 }
  0x11   : > { %p1200_p12 = pneg %p1522_p10  ;;  %s191_s17 = sshll.u32 %s1425_s16, 4  ;;  %s192_s17 = int_to_ptr.vmem [resolvable:$true] %s191_s17 }
  0x12   : > { %s206_s20 = sshll.u32 %s1646_s4, 4  ;;  %s1426_s27 = smov 64   ;;  %s207_s20 = int_to_ptr.hbm [resolvable:$true] %s206_s20 }
  0x13   : > { %p1201_p13 = pnand %p1526_p11, %p1200_p12  ;;  %s1427_s28 = smov 4  }
  0x14   : > { %s1428_s30 = smov [#allocation7]   ;;  %240 = sbr.rel (%p1522_p10) target bundleno = 387 (0x183), region = 40 }
  0x15   : > { %1203 = dma.hbm_to_vmem [thread:$0]  (!%p1201_p13), %s190_s15, 3072, %s192_s17, [#allocation5], %s1426_s27, %s1426_s27, %s1427_s28  }
  0x16   : > { %s208_s8 = sshll.u32 %s1428_s30, 4  ;;  %s209_s8 = int_to_ptr.vmem [resolvable:$true] %s208_s8 }
  0x17   : > { %1206 = dma.hbm_to_vmem [thread:$0]  (!%p1201_p13), %s207_s20, 1024, %s209_s8, [#allocation8], %s1426_s27, %s1426_s27, %s1427_s28  }
  0x19   : > { %1388 = dma.done.wait (%p1526_p11), [#allocation5], 3072  }
  0x1a   : > { %1390 = vsyncadd (%p1526_p11), [#allocation5], 4294964224 }
  0x1b   : > { %1392 = dma.done.wait (%p1526_p11), [#allocation8], 1024  }
  0x1c   : > { %1394 = vsyncadd (%p1526_p11), [#allocation8], 4294966272  ;;  %s275_s11 = sand.u32 1, %s1407_s22   ;;  %p279_p0 = scmp.lt.s32.totalorder %s1415_s24, 1 }
  0x1d   : > { %s997_s13 = sshll.u32 %s275_s11, 5  ;;  %s1152_s14 = sshll.u32 %s1415_s24, 5 }
  0x1e   : > { %s280_s15 = scalar_select %p279_p0, %s1415_s24, 1 }
  0x1f   : > { %s307_s18 = scalar_lea.vmem %s1642_s0, %s1152_s14  ;;  %s1566_s28 = scalar_lea.vmem [#allocation9], %s997_s13 }
  0x20   : > { %s1151_s19 = sshll.u32 %s280_s15, 5  ;;  %v318_v0 = vld [vmem:[%s307_s18] sm:$0xff]  ;;  %v320_v1 = vld [vmem:[%s307_s18 + $0x8] sm:$0xff]  ;;  %v322_v2 = vld [vmem:[%s307_s18 + $0x10] sm:$0xff] }
  0x21   : > { %s1564_s27 = scalar_lea.vmem %s1643_s1, %s1151_s19  ;;  %319 = vst [vmem:[#allocation2] sm:$0xff] %v318_v0  ;;  %v324_v3 = vld [vmem:[%s307_s18 + $0x18] sm:$0xff] }
  0x22   : > { %321 = vst [vmem:[#allocation2 + $0x8] sm:$0xff] %v320_v1 }
  0x23   : > { %323 = vst [vmem:[#allocation2 + $0x10] sm:$0xff] %v322_v2 }
  0x24   : > { %325 = vst [vmem:[#allocation2 + $0x18] sm:$0xff] %v324_v3 }
  0x25   : > { %331 = vsyncadd [#allocation3], 512 }
  0x26   : > { %1395 = dma.done.wait [#allocation3], 512 }
  0x27   : > { %1396 = vsyncadd [#allocation3], 4294966784  ;;  %v1170_v4 = vld [vmem:[#allocation4 + $0x78] sm:$0xff]  ;;  %v1169_v7 = vld [vmem:[#allocation4 + $0x70] sm:$0xff]  ;;  %vm506_vm0 = vcmask 1044480   ;;  %vm616_vm1 = vcmask 1046528   ;;  %s850_s18 = scalar_lea.hbm %s1648_s6, %s1152_s14 }
  0x28   : > { %v1162_v5 = vld [vmem:[#allocation4 + $0x38] sm:$0xff]  ;;  %480 = vmatpush.bf16.msra.mxu0 %v1170_v4  ;;  %v1161_v8 = vld [vmem:[#allocation4 + $0x30] sm:$0xff]  ;;  %v1168_v10 = vld [vmem:[#allocation4 + $0x68] sm:$0xff]  ;;  %s851_s19 = sshll.u32 %s1566_s28, 4  ;;  %s853_s12 = sshll.u32 %s850_s18, 4  ;;  %s852_s19 = int_to_ptr.vmem [resolvable:$true] %s851_s19  ;;  %s854_s12 = int_to_ptr.hbm [resolvable:$true] %s853_s12 }
  0x29   : > { %v1180_v6 = vld [vmem:[#allocation4 + $0xb8] sm:$0xff]  ;;  %562 = vmatpush.bf16.msra.mxu1 %v1162_v5  ;;  %v1179_v9 = vld [vmem:[#allocation4 + $0xb0] sm:$0xff]  ;;  %v1160_v11 = vld [vmem:[#allocation4 + $0x28] sm:$0xff]  ;;  %s837_s24 = scalar_lea.sflag [#allocation6], %s275_s11  ;;  %s1349_s20 = sshra.s32 %s854_s12, 4  ;;  %s1350_s20 = int_to_ptr.hbm [resolvable:$true] %s1349_s20 }
  0x2a   : > { %672 = vmatpush.bf16.msra.mxu2 %v1180_v6  ;;  %v1178_v12 = vld [vmem:[#allocation4 + $0xa8] sm:$0xff]  ;;  %v1167_v13 = vld [vmem:[#allocation4 + $0x60] sm:$0xff]  ;;  %v1166_v16 = vld [vmem:[#allocation4 + $0x58] sm:$0xff]  ;;  %s1355_s8 = scalar_lea.hbm %s1648_s6, 64  ;;  %p1356_p5 = scmp.lt.s32.totalorder %s1350_s20, %s1648_s6 }
  0x2b   : > { %v1159_v14 = vld [vmem:[#allocation4 + $0x20] sm:$0xff]  ;;  %v1158_v17 = vld [vmem:[#allocation4 + $0x18] sm:$0xff]  ;;  %v1568_v19 = vld [vmem:[#allocation2 + $0x8] sm:$0xf] }
  0x2c   : > { %481 = vmatpush.bf16.msra.mxu0 %v1169_v7  ;;  %v1177_v15 = vld [vmem:[#allocation4 + $0xa0] sm:$0xff]  ;;  %v1176_v18 = vld [vmem:[#allocation4 + $0x98] sm:$0xff]  ;;  %v1570_v20 = vld [vmem:[#allocation2 + $0xc] sm:$0xf]  ;;  %v424_v25 = vunpack.c.l.b16 %v1568_v19 }
  0x2d   : > { %563 = vmatpush.bf16.msra.mxu1 %v1161_v8  ;;  %v1572_v21 = vld [vmem:[#allocation2 + $0x10] sm:$0xf]  ;;  %v385_v22 = vld [vmem:[#allocation2 + $0x4] sm:$0x8]  ;;  %v425_v26 = vunpack.c.l.b16 %v1570_v20  ;;  %v1188_v29 = vld [vmem:[#allocation7 + $0x38] sm:$0xff] }
  0x2e   : > { %673 = vmatpush.bf16.msra.mxu2 %v1179_v9  ;;  %v1165_v23 = vld [vmem:[#allocation4 + $0x50] sm:$0xff]  ;;  %v426_v27 = vunpack.c.l.b16 %v1572_v21  ;;  %v501_v28 = vunpack.c.l.b16 %v385_v22  ;;  %v1074_v31 = vld [vmem:[#allocation2 + $0x8] sm:$0xe]  ;;  %v1171_v32 = vld [vmem:[#allocation2 + $0x8] sm:$0xf0]  ;;  %777 = vmatpush.bf16.msra.mxu3 %v1188_v29 }
  0x2f   : > { %v1157_v24 = vld [vmem:[#allocation4 + $0x10] sm:$0xff]  ;;  %v1164_v34 = vld [vmem:[#allocation4 + $0x48] sm:$0xff]  ;;  %v1075_v40 = vor.u32 %v1171_v32, %v1074_v31  ;;  %v1163_v41 = vld [vmem:[#allocation4 + $0x40] sm:$0xff]  ;;  %v428_v48 = vpack.c.b16 %v425_v26, %v424_v25 }
  0x30   : > { %482 = vmatpush.bf16.msra.mxu0 %v1168_v10  ;;  %v1175_v30 = vld [vmem:[#allocation4 + $0x90] sm:$0xff]  ;;  %v1156_v35 = vld [vmem:[#allocation4 + $0x8] sm:$0xff]  ;;  %v503_v36 = vpack.c.b16 %v424_v25, %v501_v28  ;;  %v504_v37 = vpack.c.b16 %v426_v27, %v425_v26  ;;  %v1155_v42 = vld [vmem:[#allocation4] sm:$0xff] }
  0x31   : > { %564 = vmatpush.bf16.msra.mxu1 %v1160_v11  ;;  %v1187_v33 = vld [vmem:[#allocation7 + $0x30] sm:$0xff]  ;;  %v1174_v38 = vld [vmem:[#allocation4 + $0x88] sm:$0xff]  ;;  %v1173_v45 = vld [vmem:[#allocation4 + $0x80] sm:$0xff]  ;;  %v617_v46 = vrot.slane %v1075_v40, 1 }
  0x32   : > { %674 = vmatpush.bf16.msra.mxu2 %v1178_v12  ;;  %v1172_v39 = vld [vmem:[#allocation2 + $0x10] sm:$0xff]  ;;  %778 = vmatpush.bf16.msra.mxu3 %v1187_v33  ;;  %v507_v43 = vrot.slane %v503_v36, 3  ;;  %v508_v44 = vrot.slane %v504_v37, 3  ;;  %v585_v52 = vld [vmem:[#allocation2 + $0x18] sm:$0x1]  ;;  %v1186_v0 = vld [vmem:[#allocation7 + $0x28] sm:$0xff] }
  0x33   : > { %v618_v47 = vrot.slane %v1172_v39, 1  ;;  %v386_v51 = vld [vmem:[#allocation2 + $0x14] sm:$0x7]  ;;  %v612_v54 = vunpack.c.l.b16 %v585_v52  ;;  %v1185_v1 = vld [vmem:[#allocation7 + $0x20] sm:$0xff]  ;;  %v1184_v2 = vld [vmem:[#allocation7 + $0x18] sm:$0xff]  ;;  %v797_v52 = vunpack.c.l.bf16 %v1570_v20 }
  0x34   : > { %483 = vmatpush.bf16.msra.mxu0 %v1167_v13  ;;  %v509_v49 = vsel %vm506_vm0, %v507_v43, %v508_v44  ;;  %v502_v53 = vunpack.c.l.b16 %v386_v51  ;;  %v1579_v55 = vld [vmem:[#allocation2 + $0x14] sm:$0xf]  ;;  %v1182_v4 = vld [vmem:[#allocation7 + $0x8] sm:$0xff]  ;;  %v1181_v5 = vld [vmem:[#allocation7] sm:$0xff] }
  0x35   : > { %565 = vmatpush.bf16.msra.mxu1 %v1159_v14  ;;  %v619_v50 = vsel %vm616_vm1, %v617_v46, %v618_v47  ;;  %v615_v57 = vpack.c.b16 %v612_v54, %v612_v54  ;;  %v427_v58 = vunpack.c.l.b16 %v1579_v55  ;;  %v1183_v3 = vld [vmem:[#allocation7 + $0x10] sm:$0xff]  ;;  %v804_v12 = vld [vmem:[%s1564_s27] sm:$0xff]  ;;  %v1429_v14 = vmov 0   ;;  %v805_v22 = vld [vmem:[%s1564_s27 + $0x8] sm:$0xff] }
  0x36   : > { %675 = vmatpush.bf16.msra.mxu2 %v1177_v15  ;;  %v505_v56 = vpack.c.b16 %v502_v53, %v502_v53  ;;  %779 = vmatpush.bf16.msra.mxu3 %v1186_v0  ;;  %v806_v13 = vld [vmem:[%s1564_s27 + $0x10] sm:$0xff]  ;;  %v796_v46 = vunpack.c.l.bf16 %v1568_v19  ;;  %v799_v20 = vunpack.c.l.bf16 %v1579_v55 }
  0x37   : > { %v620_v60 = vrot.slane %v615_v57, 1  ;;  %v429_v61 = vpack.c.b16 %v427_v58, %v426_v27  ;;  %1271 = vset.pattern.permute.xlu0 %v1429_v14  ;;  %1272 = vset.pattern.permute.xlu1 %v1429_v14 }
  0x38   : > { %484 = vmatpush.bf16.msra.mxu0 %v1166_v16  ;;  %v510_v59 = vrot.slane %v505_v56, 3  ;;  %810 = vperm.xlu0 %1271, %v804_v12   ;;  %v1273_v16 = vld [vmem:[%s1645_s3] ss:$0 sm:$0xff] }
  0x39   : > { %566 = vmatpush.bf16.msra.mxu1 %v1158_v17  ;;  %v621_v63 = vsel %vm616_vm1, %v618_v47, %v620_v60  ;;  %820 = vperm.xlu1 %1272, %v806_v13  }
  0x3a   : > { %676 = vmatpush.bf16.msra.mxu2 %v1176_v18  ;;  %v511_v62 = vsel %vm506_vm0, %v508_v44, %v510_v59  ;;  %780 = vmatpush.bf16.msra.mxu3 %v1185_v1  ;;  %v798_v59 = vunpack.c.l.bf16 %v1572_v21 }
  0x3c   : > { %485 = vmatpush.bf16.msra.mxu0 %v1165_v23  ;;  %v807_v23 = vld [vmem:[%s1564_s27 + $0x18] sm:$0xff]  ;;  %s1351_s27 = scalar_lea.hbm %s1350_s20, 32 }
  0x3d   : > { %567 = vmatpush.bf16.msra.mxu1 %v1157_v24  ;;  %p1352_p1 = scmp.ne.s32.totalorder %s1350_s20, %s1351_s27  ;;  %p1357_p6 = scmp.lt.s32.totalorder %s1355_s8, %s1351_s27 }
  0x3e   : > { %677 = vmatpush.bf16.msra.mxu2 %v1175_v30  ;;  %781 = vmatpush.bf16.msra.mxu3 %v1184_v2 }
  0x3f   : > { %p1353_p2 = pnand %p1352_p1, %p1507_p4  ;;  %p1358_p7 = por %p1357_p6, %p1356_p5 }
  0x40   : > { %486 = vmatpush.bf16.msra.mxu0 %v1164_v34  ;;  %815 = vperm.xlu0 %1271, %v805_v22  }
  0x41   : > { %568 = vmatpush.bf16.msra.mxu1 %v1156_v35  ;;  %825 = vperm.xlu1 %1272, %v807_v23   ;;  %p1354_p3 = pneg %p1353_p2 }
  0x42   : > { %678 = vmatpush.bf16.msra.mxu2 %v1174_v38  ;;  %782 = vmatpush.bf16.msra.mxu3 %v1183_v3 }
  0x43   : > { %p1359_p9 = pnand %p1358_p7, %p1354_p3 }
  0x44   : > { %487 = vmatpush.bf16.msra.mxu0 %v1163_v41 }
  0x45   : > { %569 = vmatpush.bf16.msra.mxu1 %v1155_v42 }
  0x46   : > { %679 = vmatpush.bf16.msra.mxu2 %v1173_v45  ;;  %783 = vmatpush.bf16.msra.mxu3 %v1182_v4  ;;  %v1274_v45 = vld [vmem:[%s1647_s5] ss:$0 sm:$0xff] }
  0x47   : > { %488 = vmatmul.bf16.vlgmr.msra.gmra.mxu0 %v428_v48 }
  0x48   : > { %570 = vmatmul.bf16.vlgmr.msra.gmra.mxu1 %v509_v49 }
  0x49   : > { %680 = vmatmul.bf16.vlgmr.msra.gmra.mxu2 %v619_v50 }
  0x4a   : > { %784 = vmatpush.bf16.msra.mxu3 %v1181_v5 }
  0x57   : > { %493 = vmatmul.bf16.gmra.mxu0 %v429_v61 }
  0x58   : > { %575 = vmatmul.bf16.gmra.mxu1 %v511_v62 }
  0x59   : > { %685 = vmatmul.bf16.gmra.mxu2 %v621_v63 }
  0xaa   : > { %v811_v48 = vpop.permute.xlu0 %810 }
  0xab   : > { %v821_v61 = vpop.permute.xlu1 %820 }
  0xb2   : > { %v816_v56 = vpop.permute.xlu0 %815 }
  0xb3   : > { %v826_v2 = vpop.permute.xlu1 %825 }
  0xc4   : > { %v489_v6 = vpop.f32.mrf.mxu0 }
  0xc5   : > { %v571_v7 = vpop.f32.mrf.mxu1 }
  0xc6   : > { %v572_v9 = vadd.f32 %v571_v7, %v489_v6 }
  0xcc   : > { %v681_v8 = vpop.f32.mrf.mxu2  ;;  %v491_v10 = vpop.f32.mrf.mxu0 }
  0xcd   : > { %v573_v11 = vpop.f32.mrf.mxu1  ;;  %v691_v15 = vadd.f32 %v681_v8, %v572_v9 }
  0xce   : > { %v574_v17 = vadd.f32 %v573_v11, %v491_v10 }
  0xcf   : > { %v699_v24 = vadd.f32 %v1273_v16, %v691_v15 }
  0xd1   : > { %v703_v29 = vmax.f32 %v699_v24, 0.0 }
  0xd4   : > { %v683_v18 = vpop.f32.mrf.mxu2  ;;  %v494_v26 = vpop.f32.mrf.mxu0 }
  0xd5   : > { %v692_v25 = vadd.f32 %v683_v18, %v574_v17  ;;  %v576_v27 = vpop.f32.mrf.mxu1 }
  0xd6   : > { %v577_v33 = vadd.f32 %v576_v27, %v494_v26 }
  0xd7   : > { %v700_v28 = vadd.f32 %v1273_v16, %v692_v25 }
  0xd9   : > { %v704_v30 = vmax.f32 %v700_v28, 0.0 }
  0xdb   : > { %v707_v31 = vpack.c.bf16 %v704_v30, %v703_v29 }
  0xdc   : > { %v686_v32 = vpop.f32.mrf.mxu2  ;;  %v496_v34 = vpop.f32.mrf.mxu0 }
  0xdd   : > { %785 = vmatmul.bf16.vlgmr.msra.gmra.mxu3 %v707_v31  ;;  %v578_v35 = vpop.f32.mrf.mxu1  ;;  %v693_v36 = vadd.f32 %v686_v32, %v577_v33 }
  0xde   : > { %v579_v37 = vadd.f32 %v578_v35, %v496_v34 }
  0xdf   : > { %v701_v39 = vadd.f32 %v1273_v16, %v693_v36 }
  0xe1   : > { %v705_v42 = vmax.f32 %v701_v39, 0.0 }
  0xe4   : > { %v688_v38 = vpop.f32.mrf.mxu2 }
  0xe5   : > { %v694_v40 = vadd.f32 %v688_v38, %v579_v37 }
  0xe7   : > { %v702_v41 = vadd.f32 %v1273_v16, %v694_v40 }
  0xe9   : > { %v706_v43 = vmax.f32 %v702_v41, 0.0 }
  0xeb   : > { %v708_v44 = vpack.c.bf16 %v706_v43, %v705_v42 }
  0xed   : > { %790 = vmatmul.bf16.gmra.mxu3 %v708_v44 }
 0x160   : > { %v786_v47 = vpop.f32.mrf.mxu3 }
 0x161   : > { %v787_v49 = vadd.f32 %v1274_v45, %v786_v47 }
 0x163   : > { %v800_v50 = vadd.f32 %v796_v46, %v787_v49 }
 0x165   : > { %v828_v51 = vmul.f32 %v811_v48, %v800_v50 }
 0x167   : > { %832 = vst [vmem:[%s1566_s28] sm:$0xff] %v828_v51 }
 0x168   : > { %v788_v53 = vpop.f32.mrf.mxu3 }
 0x169   : > { %v789_v54 = vadd.f32 %v1274_v45, %v788_v53 }
 0x16b   : > { %v801_v57 = vadd.f32 %v797_v52, %v789_v54 }
 0x16d   : > { %v829_v58 = vmul.f32 %v816_v56, %v801_v57 }
 0x16f   : > { %833 = vst [vmem:[%s1566_s28 + $0x8] sm:$0xff] %v829_v58 }
 0x170   : > { %v791_v19 = vpop.f32.mrf.mxu3 }
 0x171   : > { %v792_v60 = vadd.f32 %v1274_v45, %v791_v19 }
 0x173   : > { %v802_v62 = vadd.f32 %v798_v59, %v792_v60 }
 0x175   : > { %v830_v63 = vmul.f32 %v821_v61, %v802_v62 }
 0x177   : > { %834 = vst [vmem:[%s1566_s28 + $0x10] sm:$0xff] %v830_v63 }
 0x178   : > { %v793_v0 = vpop.f32.mrf.mxu3 }
 0x179   : > { %v794_v1 = vadd.f32 %v1274_v45, %v793_v0 }
 0x17b   : > { %v803_v21 = vadd.f32 %v799_v20, %v794_v1 }
 0x17d   : > { %v831_v3 = vmul.f32 %v826_v2, %v803_v21 }
 0x17f   : > { %835 = vst [vmem:[%s1566_s28 + $0x18] sm:$0xff] %v831_v3 }
 0x180   : > { %1362 = shalt.err (!%p1359_p9)
}
 0x181   : > { %s1430_s11 = smov 128   ;;  %s1431_s28 = smov 8  }
 0x182   : > { %1198 = dma.vmem_to_hbm [thread:$0]  (%p1507_p4), %s852_s19, 512, %s854_s12, %s837_s24, %s1430_s11, %s1430_s11, %s1431_s28  }
 0x183 PF: > { %p1215_p10 = scmp.ge.s32.totalorder %s1423_s26, 2  ;;  %s868_s16 = sand.u32 1, %s1403_s21  }
 0x184   : > { %s869_s17 = scalar_lea.sflag [#allocation6], %s868_s16 }
 0x185   : > { %p1208_p11 = pnand %p1215_p10, %p1514_p8 }
 0x187   : > { %p1209_p12 = pneg %p1208_p11 }
 0x189   : > { %1398 = dma.done.wait (%p1209_p12), %s869_s17, 512  }
 0x18a   : > { %1400 = vsyncadd (%p1209_p12), %s869_s17, 4294966784  ;;  %s21_s26 = sadd.s32 1, %s1423_s26   ;;  %s1653_s21 = smov %s1407_s22 }
 0x18b   : > { %p18_p13 = scmp.ge.s32.totalorder %s21_s26, 4   ;;  %s1654_s22 = smov %s1411_s23 }
 0x18c   : > { %s1655_s23 = smov %s1520_s10  ;;  %s1656_s24 = smov %s1419_s25 }
 0x18d   : > { %s1657_s25 = smov %s1659_s29  ;;  %20 = sbr.rel (!%p18_p13) target bundleno = 6 (0x6), region = 147 }
 0x192   :  { %875 = vsyncpa [#allocation5], 1 }
 0x193   :  { %877 = vsyncpa [#allocation5 + $0x1], 1 }
 0x194   :  { %878 = vsyncpa [#allocation8], 1 }
 0x195   :  { %879 = vsyncpa [#allocation6], 1 }
 0x196   :  { %881 = vsyncpa [#allocation6 + $0x1], 1 }
 0x197   :  { %882 = vsyncmov [#allocation3] }
 0x19a   :  { %s883_s7 = vpop.sfrf %882 }
 0x19b   :  { %p1149_p4 = scmp.ne.s32.totalorder %s883_s7, 0 }
 0x19d   :  { %887 = shalt.err (%p1149_p4)  }
 0x19e   :  { %889 = vsyncmov [#allocation3 + $0x1] }
 0x1a1   :  { %s890_s9 = vpop.sfrf %889 }
 0x1a2   :  { %p1150_p8 = scmp.ne.s32.totalorder %s890_s9, 0 }
 0x1a4   :  { %894 = shalt.err (%p1150_p8)  }

</bundles_post_ra>
